<compile_context>
chip_gen: v6e
topology: v6e:2x2x1
jax: 0.10.0
libtpu: 0.0.40
codegen_flags: <defaults>
</compile_context>

<pallas_src>
import jax
import jax.numpy as jnp
from jax.experimental import pallas as pl
from jax.experimental.pallas import tpu as pltpu


def _global_model_kernel(batch_ref, x_ref, u_ref, wx_ref, wu_ref, b_ref,
                         o_ref, acc_ref, cnt_ref):
    # batch_ref: [1, tN] int32   node -> graph id (padded nodes have id >= B)
    # x_ref:     [tN, F] f32     node feature tile
    # u_ref:     [B, U]  f32     global (graph-level) features
    # wx_ref:    [F, 4]  f32     Linear weight rows acting on the mean(x) part
    # wu_ref:    [U, 4]  f32     Linear weight rows acting on u
    # b_ref:     [1, 4]  f32     Linear bias
    # o_ref:     [B, 4]  f32     output
    # acc_ref:   [B, 4]  f32     scratch: segment_sum(x) @ W_x accumulator
    # cnt_ref:   [B, 1]  f32     scratch: nodes-per-graph accumulator
    k = pl.program_id(0)

    @pl.when(k == 0)
    def _():
        acc_ref[...] = jnp.zeros_like(acc_ref)
        cnt_ref[...] = jnp.zeros_like(cnt_ref)

    B = acc_ref.shape[0]
    tN = x_ref.shape[0]

    # One-hot assignment tile built on the fly (no HBM round trip).
    batch_ids = batch_ref[...]                                        # [1, tN]
    graph_ids = jax.lax.broadcasted_iota(jnp.int32, (B, tN), 0)       # [B, tN]
    onehot = (graph_ids == batch_ids).astype(jnp.float32)             # [B, tN]

    # Reassociated:  A @ (x @ W_x)
    xw = jnp.dot(x_ref[...], wx_ref[...],
                 preferred_element_type=jnp.float32)                  # [tN, 4]
    acc_ref[...] += jnp.dot(onehot, xw,
                            preferred_element_type=jnp.float32)       # [B, 4]
    cnt_ref[...] += onehot.sum(axis=1, keepdims=True)                 # [B, 1]

    @pl.when(k == pl.num_programs(0) - 1)
    def _():
        counts = jnp.maximum(cnt_ref[...], 1.0)          # empty graph -> 0 out
        mean_part = acc_ref[...] / counts                # == mean(x) @ W_x
        out = (jnp.dot(u_ref[...], wu_ref[...],
                       preferred_element_type=jnp.float32)
               + mean_part + b_ref[...])
        o_ref[...] = out.astype(o_ref.dtype)


def global_model_forward(x, edge_index, edge_attr, u, batch, w, b,
                         *, tile_n=512):
    """Pallas implementation of GlobalModel.forward.

    x:          [N, F] float32 node features
    edge_index: [2, E] int32   (unused by this block, kept for API parity)
    edge_attr:  [E]    float32 (unused by this block)
    u:          [B, U] float32 global features
    batch:      [N]    int32   node -> graph id
    w:          [4, U + F] float32 (PyTorch Linear weight layout)
    b:          [4]        float32
    returns:    [B, 4] float32
    """
    del edge_index, edge_attr  # not used in GlobalModel.forward
    N, F = x.shape
    B, U = u.shape
    assert w.shape == (4, U + F)

    # Lane-aligned node tile (multiple of 128) and padded node count.
    tN = min(int(tile_n), pl.next_power_of_2(max(N, 128)))
    n_pad = pl.cdiv(N, tN) * tN
    nk = n_pad // tN

    x_p = jnp.pad(x.astype(jnp.float32), ((0, n_pad - N), (0, 0)))
    # Padded nodes get graph id == B (out of range) -> zero contribution.
    batch_p = jnp.pad(batch.astype(jnp.int32), (0, n_pad - N),
                      constant_values=B)
    batch2d = batch_p.reshape(1, n_pad)

    # Split the Linear weight: first U input-columns act on u, rest on mean(x).
    wt = w.T.astype(jnp.float32)          # [U + F, 4]
    w_u = wt[:U, :]                       # [U, 4]
    w_x = wt[U:, :]                       # [F, 4]
    b2 = b.reshape(1, 4).astype(jnp.float32)

    out = pl.pallas_call(
        _global_model_kernel,
        out_shape=jax.ShapeDtypeStruct((B, 4), jnp.float32),
        grid=(nk,),
        in_specs=[
            pl.BlockSpec((1, tN), lambda k: (0, k)),    # batch ids (tiled)
            pl.BlockSpec((tN, F), lambda k: (k, 0)),    # x (tiled over N)
            pl.BlockSpec((B, U), lambda k: (0, 0)),     # u (resident)
            pl.BlockSpec((F, 4), lambda k: (0, 0)),     # W_x (resident)
            pl.BlockSpec((U, 4), lambda k: (0, 0)),     # W_u (resident)
            pl.BlockSpec((1, 4), lambda k: (0, 0)),     # bias (resident)
        ],
        out_specs=pl.BlockSpec((B, 4), lambda k: (0, 0)),
        scratch_shapes=[pltpu.VMEM((B, 4), jnp.float32),   # acc
                        pltpu.VMEM((B, 1), jnp.float32)],  # counts
        compiler_params=pltpu.CompilerParams(
            dimension_semantics=("arbitrary",)),
    )(batch2d, x_p, u.astype(jnp.float32), w_x, w_u, b2)
    return out


if __name__ == "__main__":
    key = jax.random.PRNGKey(0)
    k_x, k_u, k_w, k_b, k_e = jax.random.split(key, 5)

    # Small shapes consistent with the module: Linear(81, 4) => U + F = 81.
    B = 2          # graphs in the batch
    N = 16         # total nodes (8 per graph)
    F = 64         # node feature dim
    U = 17         # global-feature dim (17 + 64 = 81)
    E = 24         # number of edges (unused by this block)

    x = jax.random.normal(k_x, (N, F), dtype=jnp.float32)
    u = jax.random.normal(k_u, (B, U), dtype=jnp.float32)
    batch = jnp.repeat(jnp.arange(B, dtype=jnp.int32), N // B)       # [N]
    edge_index = jax.random.randint(k_e, (2, E), 0, N, dtype=jnp.int32)
    edge_attr = jax.random.normal(k_e, (E,), dtype=jnp.float32)

    # Deterministic Linear(81, 4) parameters (PyTorch layout: W [4, 81], b [4]).
    w = 0.05 * jax.random.normal(k_w, (4, U + F), dtype=jnp.float32)
    b = 0.05 * jax.random.normal(k_b, (4,), dtype=jnp.float32)

    out = global_model_forward(x, edge_index, edge_attr, u, batch, w, b)
    out = jax.block_until_ready(out)

    # Pure-JAX reference check (concat + segment mean + linear).
    seg_sum = jnp.zeros((B, F), jnp.float32).at[batch].add(x)
    seg_cnt = jnp.maximum(jnp.zeros((B, 1), jnp.float32).at[batch].add(1.0), 1.0)
    ref = jnp.concatenate([u, seg_sum / seg_cnt], axis=1) @ w.T + b
    assert out.shape == (B, 4)
    assert jnp.allclose(out, ref, atol=1e-5, rtol=1e-5)

    print("KERNEL_OK")
</pallas_src>

<mosaic_0001>
module attributes {stable_mosaic.version = 11 : i64} {
  func.func @_global_model_kernel(%arg0: i32, %arg1: memref<1x128xi32, #tpu.memory_space<vmem>>, %arg2: memref<128x64xf32, #tpu.memory_space<vmem>>, %arg3: memref<2x17xf32, #tpu.memory_space<vmem>>, %arg4: memref<64x4xf32, #tpu.memory_space<vmem>>, %arg5: memref<17x4xf32, #tpu.memory_space<vmem>>, %arg6: memref<1x4xf32, #tpu.memory_space<vmem>>, %arg7: memref<2x4xf32, #tpu.memory_space<vmem>>, %arg8: memref<2x4xf32, #tpu.memory_space<vmem>>, %arg9: memref<2x1xf32, #tpu.memory_space<vmem>>) attributes {dimension_semantics = [#tpu.dimension_semantics<arbitrary>], iteration_bounds = array<i64: 1>, scalar_prefetch = 0 : i64, scratch_operands = 2 : i64, tpu.core_type = #tpu.core_type<tc>, window_params = [{transform_indices = @transform_0, window_bounds = array<i64: 1, 128>}, {transform_indices = @transform_1, window_bounds = array<i64: 128, 64>}, {pipeline_mode = #tpu.pipeline_mode<synchronous>, transform_indices = @transform_2, window_bounds = array<i64: 2, 17>}, {pipeline_mode = #tpu.pipeline_mode<synchronous>, transform_indices = @transform_3, window_bounds = array<i64: 64, 4>}, {pipeline_mode = #tpu.pipeline_mode<synchronous>, transform_indices = @transform_4, window_bounds = array<i64: 17, 4>}, {pipeline_mode = #tpu.pipeline_mode<synchronous>, transform_indices = @transform_5, window_bounds = array<i64: 1, 4>}, {pipeline_mode = #tpu.pipeline_mode<synchronous>, transform_indices = @transform_6, window_bounds = array<i64: 2, 4>}]} {
    %c0_i32 = arith.constant 0 : i32
    %0 = arith.cmpi eq, %arg0, %c0_i32 : i32
    %1 = arith.extui %0 : i1 to i32
    %c0_i32_0 = arith.constant 0 : i32
    %2 = arith.cmpi ne, %1, %c0_i32_0 : i32
    scf.if %2 {
      %cst_18 = arith.constant 0.000000e+00 : f32
      %24 = vector.broadcast %cst_18 : f32 to vector<2x4xf32>
      %c0_19 = arith.constant 0 : index
      %c0_20 = arith.constant 0 : index
      %25 = vector.load %arg8[%c0_19, %c0_20] : memref<2x4xf32, #tpu.memory_space<vmem>>, vector<2x4xf32>
      tpu.vector_store %arg8[%c0_19, %c0_20], %24 {strides = array<i32>} : memref<2x4xf32, #tpu.memory_space<vmem>>, vector<2x4xf32>,
      %cst_21 = arith.constant 0.000000e+00 : f32
      %26 = vector.broadcast %cst_21 : f32 to vector<2x1xf32>
      %c0_22 = arith.constant 0 : index
      %c0_23 = arith.constant 0 : index
      %27 = vector.load %arg9[%c0_22, %c0_23] : memref<2x1xf32, #tpu.memory_space<vmem>>, vector<2x1xf32>
      tpu.vector_store %arg9[%c0_22, %c0_23], %26 {strides = array<i32>} : memref<2x1xf32, #tpu.memory_space<vmem>>, vector<2x1xf32>,
    } else {
    }
    %c0 = arith.constant 0 : index
    %c0_1 = arith.constant 0 : index
    %3 = vector.load %arg1[%c0, %c0_1] : memref<1x128xi32, #tpu.memory_space<vmem>>, vector<1x128xi32>
    %4 = tpu.iota {dimensions = array<i32: 0>} : vector<2x128xi32>
    %5 = vector.broadcast %3 : vector<1x128xi32> to vector<2x128xi32>
    %6 = arith.cmpi eq, %4, %5 : vector<2x128xi32>
    %7 = arith.extui %6 : vector<2x128xi1> to vector<2x128xi32>
    %8 = arith.sitofp %7 : vector<2x128xi32> to vector<2x128xf32>
    %c0_2 = arith.constant 0 : index
    %c0_3 = arith.constant 0 : index
    %9 = vector.load %arg2[%c0_2, %c0_3] : memref<128x64xf32, #tpu.memory_space<vmem>>, vector<128x64xf32>
    %c0_4 = arith.constant 0 : index
    %c0_5 = arith.constant 0 : index
    %10 = vector.load %arg4[%c0_4, %c0_5] : memref<64x4xf32, #tpu.memory_space<vmem>>, vector<64x4xf32>
    %cst = arith.constant dense<0.000000e+00> : vector<128x4xf32>
    %11 = tpu.matmul %9, %10, %cst {dimension_numbers = #tpu.dot_dimension_numbers<[1], [0], [0], [1], [0, 0, 1, 1], [], []>} : vector<128x64xf32>, vector<64x4xf32>, vector<128x4xf32> -> vector<128x4xf32>
    %c0_6 = arith.constant 0 : index
    %c0_7 = arith.constant 0 : index
    %12 = vector.load %arg8[%c0_6, %c0_7] : memref<2x4xf32, #tpu.memory_space<vmem>>, vector<2x4xf32>
    %cst_8 = arith.constant dense<0.000000e+00> : vector<2x4xf32>
    %13 = tpu.matmul %8, %11, %cst_8 {dimension_numbers = #tpu.dot_dimension_numbers<[1], [0], [0], [1], [0, 0, 1, 1], [], []>} : vector<2x128xf32>, vector<128x4xf32>, vector<2x4xf32> -> vector<2x4xf32>
    %14 = arith.addf %12, %13 : vector<2x4xf32>
    %c0_9 = arith.constant 0 : index
    %c0_10 = arith.constant 0 : index
    %15 = vector.load %arg8[%c0_9, %c0_10] : memref<2x4xf32, #tpu.memory_space<vmem>>, vector<2x4xf32>
    tpu.vector_store %arg8[%c0_9, %c0_10], %14 {strides = array<i32>} : memref<2x4xf32, #tpu.memory_space<vmem>>, vector<2x4xf32>,
    %c0_11 = arith.constant 0 : index
    %c0_12 = arith.constant 0 : index
    %16 = vector.load %arg9[%c0_11, %c0_12] : memref<2x1xf32, #tpu.memory_space<vmem>>, vector<2x1xf32>
    %cst_13 = arith.constant dense<0.000000e+00> : vector<2xf32>
    %17 = vector.multi_reduction <add>, %8, %cst_13 [1] : vector<2x128xf32> to vector<2xf32>
    %18 = vector.shape_cast %17 : vector<2xf32> to vector<2x1xf32>
    %19 = arith.addf %16, %18 : vector<2x1xf32>
    %c0_14 = arith.constant 0 : index
    %c0_15 = arith.constant 0 : index
    %20 = vector.load %arg9[%c0_14, %c0_15] : memref<2x1xf32, #tpu.memory_space<vmem>>, vector<2x1xf32>
    tpu.vector_store %arg9[%c0_14, %c0_15], %19 {strides = array<i32>} : memref<2x1xf32, #tpu.memory_space<vmem>>, vector<2x1xf32>,
    %c0_i32_16 = arith.constant 0 : i32
    %21 = arith.cmpi eq, %arg0, %c0_i32_16 : i32
    %22 = arith.extui %21 : i1 to i32
    %c0_i32_17 = arith.constant 0 : i32
    %23 = arith.cmpi ne, %22, %c0_i32_17 : i32
    scf.if %23 {
      %c0_18 = arith.constant 0 : index
      %c0_19 = arith.constant 0 : index
      %24 = vector.load %arg9[%c0_18, %c0_19] : memref<2x1xf32, #tpu.memory_space<vmem>>, vector<2x1xf32>
      %cst_20 = arith.constant 1.000000e+00 : f32
      %25 = vector.broadcast %cst_20 : f32 to vector<2x1xf32>
      %26 = arith.maximumf %24, %25 : vector<2x1xf32>
      %c0_21 = arith.constant 0 : index
      %c0_22 = arith.constant 0 : index
      %27 = vector.load %arg8[%c0_21, %c0_22] : memref<2x4xf32, #tpu.memory_space<vmem>>, vector<2x4xf32>
      %28 = vector.broadcast %26 : vector<2x1xf32> to vector<2x4xf32>
      %29 = arith.divf %27, %28 : vector<2x4xf32>
      %c0_23 = arith.constant 0 : index
      %c0_24 = arith.constant 0 : index
      %30 = vector.load %arg3[%c0_23, %c0_24] : memref<2x17xf32, #tpu.memory_space<vmem>>, vector<2x17xf32>
      %c0_25 = arith.constant 0 : index
      %c0_26 = arith.constant 0 : index
      %31 = vector.load %arg5[%c0_25, %c0_26] : memref<17x4xf32, #tpu.memory_space<vmem>>, vector<17x4xf32>
      %cst_27 = arith.constant dense<0.000000e+00> : vector<2x4xf32>
      %32 = tpu.matmul %30, %31, %cst_27 {dimension_numbers = #tpu.dot_dimension_numbers<[1], [0], [0], [1], [0, 0, 1, 1], [], []>} : vector<2x17xf32>, vector<17x4xf32>, vector<2x4xf32> -> vector<2x4xf32>
      %33 = arith.addf %32, %29 : vector<2x4xf32>
      %c0_28 = arith.constant 0 : index
      %c0_29 = arith.constant 0 : index
      %34 = vector.load %arg6[%c0_28, %c0_29] : memref<1x4xf32, #tpu.memory_space<vmem>>, vector<1x4xf32>
      %35 = vector.broadcast %34 : vector<1x4xf32> to vector<2x4xf32>
      %36 = arith.addf %33, %35 : vector<2x4xf32>
      %c0_30 = arith.constant 0 : index
      %c0_31 = arith.constant 0 : index
      %37 = vector.load %arg7[%c0_30, %c0_31] : memref<2x4xf32, #tpu.memory_space<vmem>>, vector<2x4xf32>
      tpu.vector_store %arg7[%c0_30, %c0_31], %36 {strides = array<i32>} : memref<2x4xf32, #tpu.memory_space<vmem>>, vector<2x4xf32>,
    } else {
    }
    return
  }
  func.func @transform_0(%arg0: i32) -> (i32, i32) {
    %c0_i32 = arith.constant 0 : i32
    %c0_i32_0 = arith.constant 0 : i32
    return %c0_i32, %arg0 : i32, i32
  }
  func.func @transform_1(%arg0: i32) -> (i32, i32) {
    %c0_i32 = arith.constant 0 : i32
    %c0_i32_0 = arith.constant 0 : i32
    return %arg0, %c0_i32 : i32, i32
  }
  func.func @transform_2(%arg0: i32) -> (i32, i32) {
    %c0_i32 = arith.constant 0 : i32
    %c0_i32_0 = arith.constant 0 : i32
    %c0_i32_1 = arith.constant 0 : i32
    return %c0_i32, %c0_i32_0 : i32, i32
  }
  func.func @transform_3(%arg0: i32) -> (i32, i32) {
    %c0_i32 = arith.constant 0 : i32
    %c0_i32_0 = arith.constant 0 : i32
    %c0_i32_1 = arith.constant 0 : i32
    return %c0_i32, %c0_i32_0 : i32, i32
  }
  func.func @transform_4(%arg0: i32) -> (i32, i32) {
    %c0_i32 = arith.constant 0 : i32
    %c0_i32_0 = arith.constant 0 : i32
    %c0_i32_1 = arith.constant 0 : i32
    return %c0_i32, %c0_i32_0 : i32, i32
  }
  func.func @transform_5(%arg0: i32) -> (i32, i32) {
    %c0_i32 = arith.constant 0 : i32
    %c0_i32_0 = arith.constant 0 : i32
    %c0_i32_1 = arith.constant 0 : i32
    return %c0_i32, %c0_i32_0 : i32, i32
  }
  func.func @transform_6(%arg0: i32) -> (i32, i32) {
    %c0_i32 = arith.constant 0 : i32
    %c0_i32_0 = arith.constant 0 : i32
    %c0_i32_1 = arith.constant 0 : i32
    return %c0_i32, %c0_i32_0 : i32, i32
  }
}

</mosaic_0001>

<bundles_post_ra>
// kernel: tpu_custom_call.1
= control target key start
LH: loop header
LB: loop body
LE: loop exit
PB: predicated region body
PF: predicated region fallthrough
CT: control target
= control target key end

     0   :  { %vm66_vm0 = vcmask 523264   ;;  %v33_v2 = vlaneseq  ;;  %v641_v3 = vmov 0.0   ;;  %vm335_vm1 = vcmask 1041408   ;;  %s831_s0 = inlined_call_operand.vmem [shape: s32[1,128], index: 0, kind: input, shape index: {}]   ;;  %s832_s1 = inlined_call_operand.vmem [shape: f32[128,64], index: 1, kind: input, shape index: {}]   ;;  %s833_s2 = inlined_call_operand.vmem [shape: f32[2,17], index: 2, kind: input, shape index: {}]   ;;  %s834_s3 = inlined_call_operand.vmem [shape: f32[64,4], index: 3, kind: input, shape index: {}]   ;;  %s835_s4 = inlined_call_operand.vmem [shape: f32[17,4], index: 4, kind: input, shape index: {}]   ;;  %s836_s5 = inlined_call_operand.vmem [shape: f32[1,4], index: 5, kind: input, shape index: {}]   ;;  %s837_s6 = inlined_call_operand.hbm [shape: f32[2,4], index: 6, kind: output, shape index: {}]  }
   0x1   :  { %v65_v0 = vld [vmem:[%s834_s3 + $0x38] sm:$0xff]  ;;  %v64_v1 = vld [vmem:[%s834_s3 + $0x30] sm:$0xff]  ;;  %567 = vmatprep.subr.mxu1 %v641_v3  ;;  %v63_v4 = vld [vmem:[%s834_s3 + $0x28] sm:$0xff] }
   0x2   :  { %527 = vmatprep.subr.mxu0 %v65_v0  ;;  %v42_v5 = vld [vmem:[%s832_s1] sm:$0xff]  ;;  %v698_v7 = vshrl.u32 %v33_v2, 7  ;;  %v61_v8 = vld [vmem:[%s834_s3 + $0x18] sm:$0xff]  ;;  %v60_v9 = vld [vmem:[%s834_s3 + $0x10] sm:$0xff] }
   0x3   :  { %528 = vmatpush3.msra.mxu0 %v65_v0  ;;  %543 = vmatprep.mubr.msk.f32.mxu0 %vm66_vm0, %v42_v5  ;;  %v62_v6 = vld [vmem:[%s834_s3 + $0x20] sm:$0xff] }
   0x4   :  { %529 = vmatprep.subr.mxu0 %v64_v1  ;;  %v709_v10 = vld [vmem:[%s831_s0] ss:$0 sm:$0xff] }
   0x5   :  { %530 = vmatpush3.msra.mxu0 %v64_v1 }
   0x6   :  { %531 = vmatprep.subr.mxu0 %v63_v4 }
   0x7   :  { %532 = vmatpush3.msra.mxu0 %v63_v4 }
   0x8   :  { %533 = vmatprep.subr.mxu0 %v62_v6 }
   0x9   :  { %534 = vmatpush3.msra.mxu0 %v62_v6 }
   0xa   :  { %11 = vsyncpa [#allocation5], 0  ;;  %535 = vmatprep.subr.mxu0 %v61_v8  ;;  %vm39_vm2 = vcmp.eq.s32.totalorder %v698_v7, %v709_v10  ;;  %v59_v11 = vld [vmem:[%s834_s3 + $0x8] sm:$0xff]  ;;  %v58_v14 = vld [vmem:[%s834_s3] sm:$0xff]  ;;  %vm642_vm3 = vmmov 0   ;;  %vm30_vm4 = vcmask 1024  }
   0xb   :  { %536 = vmatpush3.msra.mxu0 %v61_v8  ;;  %v461_v12 = vsel %vm39_vm2, 1.0, %v641_v3  ;;  %v43_v15 = vld [vmem:[%s832_s1 + $0x8] sm:$0xff]  ;;  %v44_v16 = vld [vmem:[%s832_s1 + $0x10] sm:$0xff]  ;;  %v45_v17 = vld [vmem:[%s832_s1 + $0x18] sm:$0xff]  ;;  %599 = vmatprep.mubr.msk.f32.mxu1 %vm642_vm3, %v641_v3  ;;  %31 = vst.msk [vmem:[#allocation3] sm:$0x3] %vm30_vm4, %v641_v3 }
   0xc   :  { %537 = vmatprep.subr.mxu0 %v60_v9  ;;  %v336_v13 = vsel %vm335_vm1, %v461_v12, 0.0  ;;  %v46_v18 = vld [vmem:[%s832_s1 + $0x20] sm:$0xff]  ;;  %v47_v19 = vld [vmem:[%s832_s1 + $0x28] sm:$0xff]  ;;  %v48_v20 = vld [vmem:[%s832_s1 + $0x30] sm:$0xff]  ;;  %v643_v30 = vmov 0   ;;  %vm28_vm5 = vcmask 25600  }
   0xd   :  { %538 = vmatpush3.msra.mxu0 %v60_v9  ;;  %337 = vadd.xlane.f32.xlu0 %v336_v13  ;;  %v49_v21 = vld [vmem:[%s832_s1 + $0x38] sm:$0xff]  ;;  %v50_v22 = vld [vmem:[%s832_s1 + $0x40] sm:$0xff]  ;;  %v51_v23 = vld [vmem:[%s832_s1 + $0x48] sm:$0xff]  ;;  %29 = vst.msk [vmem:[#allocation2] sm:$0x3] %vm28_vm5, %v641_v3  ;;  %vm363_vm6 = vcmask 1040384  }
   0xe   :  { %539 = vmatprep.subr.mxu0 %v59_v11  ;;  %v52_v24 = vld [vmem:[%s832_s1 + $0x50] sm:$0xff]  ;;  %v53_v25 = vld [vmem:[%s832_s1 + $0x58] sm:$0xff]  ;;  %v54_v26 = vld [vmem:[%s832_s1 + $0x60] sm:$0xff]  ;;  %616 = vset.pattern.permute.xlu0 %v643_v30  ;;  %v644_v53 = vmov 1.0   ;;  %vm359_vm7 = vcmask 138240   ;;  %s645_s26 = smov [#allocation4]  }
   0xf   :  { %540 = vmatpush3.msra.mxu0 %v59_v11  ;;  %v55_v27 = vld [vmem:[%s832_s1 + $0x68] sm:$0xff]  ;;  %v56_v28 = vld [vmem:[%s832_s1 + $0x70] sm:$0xff]  ;;  %v57_v29 = vld [vmem:[%s832_s1 + $0x78] sm:$0xff]  ;;  %s452_s27 = sshll.u32 %s645_s26, 4  ;;  %s453_s27 = int_to_ptr.vmem [resolvable:$true] %s452_s27 }
  0x10   :  { %541 = vmatprep.subr.mxu0 %v58_v14  ;;  %v358_v52 = vld [vmem:[%s835_s4 + $0x10] sm:$0x1]  ;;  %v357_v54 = vld [vmem:[%s835_s4 + $0x8] sm:$0xff]  ;;  %v356_v55 = vld [vmem:[%s835_s4] sm:$0xff]  ;;  %s619_s28 = scalar_lea.vmem %s453_s27, 32  ;;  %p624_p1 = scmp.lt.s32.totalorder %s453_s27, %s453_s27 }
  0x11   :  { %542 = vmatpush3.msra.mxu0 %v58_v14  ;;  %v355_v56 = vld [vmem:[%s833_s2] sm:$0x3]  ;;  %p620_p0 = scmp.ne.s32.totalorder %s453_s27, %s619_s28  ;;  %p625_p2 = scmp.lt.s32.totalorder %s619_s28, %s619_s28 }
  0x12   :  { %544 = vmatmul.mubr.msk.f32.vlgmr.msra.gmra.mxu0 %vm66_vm0, %v43_v15  ;;  %v334_v32 = vld [vmem:[#allocation3] sm:$0x3]  ;;  %v481_v4 = vld [vmem:[%s836_s5] ss:$0 sm:$0xff] }
  0x13   :  { %546 = vmatprep.mubr.msk.f32.mxu0 %vm66_vm0, %v44_v16  ;;  %p626_p3 = por %p625_p2, %p624_p1 }
  0x14   :  { %v260_v58 = vld [vmem:[#allocation2] sm:$0x3] }
  0x15   :  { %p627_p4 = pnand %p626_p3, %p620_p0 }
  0x16   :  { %547 = vmatmul.mubr.msk.f32.gmra.mxu0 %vm66_vm0, %v45_v17 }
  0x17   :  { %549 = vmatprep.mubr.msk.f32.mxu0 %vm66_vm0, %v46_v18 }
  0x1a   :  { %550 = vmatmul.mubr.msk.f32.gmra.mxu0 %vm66_vm0, %v47_v19 }
  0x1b   :  { %552 = vmatprep.mubr.msk.f32.mxu0 %vm66_vm0, %v48_v20 }
  0x1e   :  { %553 = vmatmul.mubr.msk.f32.gmra.mxu0 %vm66_vm0, %v49_v21 }
  0x1f   :  { %555 = vmatprep.mubr.msk.f32.mxu0 %vm66_vm0, %v50_v22 }
  0x22   :  { %556 = vmatmul.mubr.msk.f32.gmra.mxu0 %vm66_vm0, %v51_v23 }
  0x23   :  { %558 = vmatprep.mubr.msk.f32.mxu0 %vm66_vm0, %v52_v24 }
  0x26   :  { %559 = vmatmul.mubr.msk.f32.gmra.mxu0 %vm66_vm0, %v53_v25 }
  0x27   :  { %561 = vmatprep.mubr.msk.f32.mxu0 %vm66_vm0, %v54_v26 }
  0x2a   :  { %562 = vmatmul.mubr.msk.f32.gmra.mxu0 %vm66_vm0, %v55_v27 }
  0x2b   :  { %564 = vmatprep.mubr.msk.f32.mxu0 %vm66_vm0, %v56_v28 }
  0x2e   :  { %565 = vmatmul.mubr.msk.f32.gmra.mxu0 %vm66_vm0, %v57_v29 }
  0x96   :  { %v338_v31 = vpop.xlane.xlu0 %337 }
  0x97   :  { %v339_v33 = vadd.f32 %v338_v31, %v334_v32 }
  0x99   :  { %341 = vst.msk [vmem:[#allocation3] sm:$0x3] %vm30_vm4, %v339_v33 }
  0xa0   :  { %v345_v34 = vld [vmem:[#allocation3] sm:$0x3] }
  0xa1   :  { %v346_v35 = vmax.f32 %v345_v34, 1.0 }
  0xa3   :  { %350 = vperm.xlu0 %616, %v346_v35  }
  0xd2   :  { %v545_v36 = vpop.f32.mrf.mxu0 }
  0xd4   :  { %v181_v37 = vpop.f32.mrf.mxu0 }
  0xd6   :  { %v548_v38 = vpop.f32.mrf.mxu0 }
  0xd8   :  { %v191_v39 = vpop.f32.mrf.mxu0 }
  0xda   :  { %v551_v40 = vpop.f32.mrf.mxu0 }
  0xdc   :  { %v201_v41 = vpop.f32.mrf.mxu0 }
  0xde   :  { %v554_v42 = vpop.f32.mrf.mxu0 }
  0xe0   :  { %v211_v43 = vpop.f32.mrf.mxu0 }
  0xe2   :  { %v557_v44 = vpop.f32.mrf.mxu0 }
  0xe4   :  { %v221_v45 = vpop.f32.mrf.mxu0 }
  0xe6   :  { %v560_v46 = vpop.f32.mrf.mxu0 }
  0xe8   :  { %v231_v47 = vpop.f32.mrf.mxu0 }
  0xea   :  { %v563_v48 = vpop.f32.mrf.mxu0 }
  0xec   :  { %v241_v49 = vpop.f32.mrf.mxu0 }
  0xee   :  { %v566_v50 = vpop.f32.mrf.mxu0 }
  0xef   :  { %568 = vmatpush3.msra.mxu1 %v566_v50 }
  0xf0   :  { %v251_v51 = vpop.f32.mrf.mxu0  ;;  %569 = vmatprep.subr.mxu1 %v641_v3 }
  0xf1   :  { %570 = vmatpush3.msra.mxu1 %v251_v51 }
  0xf2   :  { %571 = vmatprep.subr.mxu1 %v641_v3 }
  0xf3   :  { %572 = vmatpush3.msra.mxu1 %v563_v48 }
  0xf4   :  { %573 = vmatprep.subr.mxu1 %v641_v3 }
  0xf5   :  { %574 = vmatpush3.msra.mxu1 %v241_v49 }
  0xf6   :  { %575 = vmatprep.subr.mxu1 %v641_v3 }
  0xf7   :  { %576 = vmatpush3.msra.mxu1 %v560_v46 }
  0xf8   :  { %577 = vmatprep.subr.mxu1 %v641_v3 }
  0xf9   :  { %578 = vmatpush3.msra.mxu1 %v231_v47 }
  0xfa   :  { %579 = vmatprep.subr.mxu1 %v641_v3 }
  0xfb   :  { %580 = vmatpush3.msra.mxu1 %v557_v44 }
  0xfc   :  { %581 = vmatprep.subr.mxu1 %v641_v3 }
  0xfd   :  { %582 = vmatpush3.msra.mxu1 %v221_v45 }
  0xfe   :  { %583 = vmatprep.subr.mxu1 %v641_v3 }
  0xff   :  { %584 = vmatpush3.msra.mxu1 %v554_v42 }
 0x100   :  { %585 = vmatprep.subr.mxu1 %v641_v3 }
 0x101   :  { %586 = vmatpush3.msra.mxu1 %v211_v43 }
 0x102   :  { %587 = vmatprep.subr.mxu1 %v641_v3 }
 0x103   :  { %588 = vmatpush3.msra.mxu1 %v551_v40 }
 0x104   :  { %589 = vmatprep.subr.mxu1 %v641_v3 }
 0x105   :  { %590 = vmatpush3.msra.mxu1 %v201_v41 }
 0x106   :  { %591 = vmatprep.subr.mxu1 %v641_v3 }
 0x107   :  { %592 = vmatpush3.msra.mxu1 %v548_v38 }
 0x108   :  { %593 = vmatprep.subr.mxu1 %v641_v3 }
 0x109   :  { %594 = vmatpush3.msra.mxu1 %v191_v39 }
 0x10a   :  { %595 = vmatprep.subr.mxu1 %v641_v3 }
 0x10b   :  { %596 = vmatpush3.msra.mxu1 %v545_v36 }
 0x10c   :  { %597 = vmatprep.subr.mxu1 %v641_v3 }
 0x10d   :  { %598 = vmatpush3.msra.mxu1 %v181_v37 }
 0x10e   :  { %600 = vmatmul.mubr.msk.f32.vlgmr.msra.gmra.mxu1 %vm39_vm2, %v644_v53  ;;  %602 = vmatprep.subr.mxu1 %v641_v3 }
 0x10f   :  { %603 = vmatpush3.msk.msra.mxu1 %vm363_vm6, %v358_v52  ;;  %608 = vmatprep.mubr.msk.f32.mxu1 %vm642_vm3, %v641_v3 }
 0x110   :  { %604 = vmatprep.subr.mxu1 %v641_v3 }
 0x111   :  { %605 = vmatpush3.msra.mxu1 %v357_v54 }
 0x112   :  { %606 = vmatprep.subr.mxu1 %v641_v3 }
 0x113   :  { %607 = vmatpush3.msra.mxu1 %v356_v55 }
 0x114   :  { %609 = vmatmul.mubr.msk.f32.vlgmr.msra.gmra.mxu1 %vm359_vm7, %v355_v56 }
 0x11e   :  { %v351_v57 = vpop.permute.xlu0 %350 }
 0x11f   :  { %617 = vrcp.f32 %v351_v57 }
 0x12c   :  { %v618_v63 = vpop.eup %617 }
 0x1ce   :  { %v327_v59 = vpop.f32.mrf.mxu1 }
 0x1cf   :  { %v331_v60 = vadd.f32 %v327_v59, %v260_v58 }
 0x1d0   :  { %v601_v61 = vpop.f32.mrf.mxu1 }
 0x1d1   :  { %333 = vst.msk [vmem:[#allocation2] sm:$0x3] %vm28_vm5, %v331_v60 }
 0x1d4   :  { %v433_v62 = vpop.f32.mrf.mxu1 }
 0x1d6   :  { %v610_v0 = vpop.f32.mrf.mxu1 }
 0x1d8   :  { %v347_v1 = vld [vmem:[#allocation2] sm:$0x3] }
 0x1d9   :  { %v354_v2 = vmul.f32 %v618_v63, %v347_v1 }
 0x1db   :  { %v434_v3 = vadd.f32 %v433_v62, %v354_v2 }
 0x1dd   :  { %v444_v5 = vadd.f32 %v481_v4, %v434_v3 }
 0x1df   :  { %445 = vst.msk [vmem:[#allocation4] sm:$0x3] %vm28_vm5, %v444_v5 }
 0x1e0   :  { %630 = shalt.err (!%p627_p4)
}
 0x1e1   :  { %455 = dma.vmem_to_hbm [thread:$0]  %s453_s27, 32, %s837_s6, [#allocation5]  }
 0x1e2   :  { %639 = dma.done.wait [#allocation5], 32  }
 0x1e3   :  { %640 = vsyncadd [#allocation5], 4294967264 }
 0x1e4   :  { %459 = vsyncpa [#allocation5], 1 }

</bundles_post_ra>
